<compile_context>
chip_gen: v7x
topology: tpu7x:2x2x1
jax: 0.10.0
libtpu: 0.0.40
codegen_flags: <defaults>
</compile_context>

<pallas_src>
import functools
import math

import jax
import jax.numpy as jnp
from jax import lax
from jax.experimental import pallas as pl
from jax.experimental.pallas import tpu as pltpu


def _hash_mix_u32(z):
    """splitmix32-style finalizer; pure jnp so it lowers on TPU and in interpret mode."""
    z = z ^ (z >> jnp.uint32(16))
    z = z * jnp.uint32(0x7FEB352D)
    z = z ^ (z >> jnp.uint32(15))
    z = z * jnp.uint32(0x846CA68B)
    z = z ^ (z >> jnp.uint32(16))
    return z


def regressor_kernel(seed_ref, x_ref, w1_ref, b_ref, w2_ref, o_ref,
                     *, h_dim: int, apply_dropout: bool):
    # Load the packed bias once: (1, h_dim + y_dim) -> b1 (1, h_dim), b2 (1, y_dim)
    bias = b_ref[...]
    b1 = bias[:, :h_dim]
    b2 = bias[:, h_dim:]

    # hidden = relu(x @ W1 + b1)
    h = jnp.dot(x_ref[...], w1_ref[...], preferred_element_type=jnp.float32)
    h = jnp.maximum(h + b1, 0.0)

    if apply_dropout:
        # Dropout(p=0.5), inverted scaling 1/(1-p)=2, folded into a single select.
        step = pl.program_id(0).astype(jnp.uint32)
        seed = seed_ref[0].astype(jnp.uint32)
        rows = lax.broadcasted_iota(jnp.uint32, h.shape, 0)
        cols = lax.broadcasted_iota(jnp.uint32, h.shape, 1)
        elem = (step * jnp.uint32(h.shape[0]) + rows) * jnp.uint32(h.shape[1]) + cols
        z = _hash_mix_u32(elem ^ (seed * jnp.uint32(0x9E3779B9) + jnp.uint32(0x85EBCA6B)))
        keep = (z >> jnp.uint32(31)) == jnp.uint32(0)      # Bernoulli(0.5) on the top bit
        h = jnp.where(keep, h * 2.0, 0.0)

    # logits = h @ W2 + b2
    y = jnp.dot(h, w2_ref[...], preferred_element_type=jnp.float32)
    o_ref[...] = (y + b2).astype(o_ref.dtype)


def regressor_forward(x, params, *, seed: int = 0, training: bool = True,
                      max_batch_tile: int = 512):
    """Fused Linear->ReLU->Dropout->Linear forward as one gridded Pallas call.

    The grid runs over batch tiles; weights and the packed bias stay resident
    (constant index_maps), so N batch tiles cost one launch + one weight DMA.
    """
    w1, b1, w2, b2 = params
    batch, input_dim = x.shape
    h_dim = w1.shape[1]
    y_dim = w2.shape[1]

    # Pack both biases into a single small VMEM input (one fewer startup DMA).
    bias = jnp.concatenate([b1, b2], axis=1)          # (1, h_dim + y_dim)

    def round_up(v, m):
        return ((v + m - 1) // m) * m

    tile_b = min(round_up(batch, 8), max_batch_tile)
    padded = round_up(batch, tile_b)
    if padded != batch:
        x = jnp.pad(x, ((0, padded - batch), (0, 0)))
    grid = (padded // tile_b,)

    kernel = functools.partial(regressor_kernel, h_dim=h_dim, apply_dropout=training)
    seed_arr = jnp.asarray([seed], dtype=jnp.int32)

    out = pl.pallas_call(
        kernel,
        out_shape=jax.ShapeDtypeStruct((padded, y_dim), jnp.float32),
        grid_spec=pltpu.PrefetchScalarGridSpec(
            num_scalar_prefetch=1,                    # seed lives in SMEM
            grid=grid,
            in_specs=[
                pl.BlockSpec((tile_b, input_dim), lambda i, seed: (i, 0)),   # x tile
                pl.BlockSpec((input_dim, h_dim), lambda i, seed: (0, 0)),    # W1 resident
                pl.BlockSpec((1, h_dim + y_dim), lambda i, seed: (0, 0)),    # packed bias
                pl.BlockSpec((h_dim, y_dim), lambda i, seed: (0, 0)),        # W2 resident
            ],
            out_specs=pl.BlockSpec((tile_b, y_dim), lambda i, seed: (i, 0)),
        ),
        compiler_params=pltpu.CompilerParams(
            dimension_semantics=("parallel",)),       # shard batch tiles across TCs (v7x)
    )(seed_arr, x, w1, bias, w2)

    return out[:batch]


def init_regressor_params(key, input_dim, h_dim, y_dim):
    """Deterministic init matching the module: xavier_normal_ weights, bias = 0.1.

    Weights are stored transposed relative to PyTorch, i.e. (in, out).
    """
    k1, k2 = jax.random.split(key)
    std1 = math.sqrt(2.0 / (input_dim + h_dim))   # xavier normal, gain=1
    std2 = math.sqrt(2.0 / (h_dim + y_dim))
    w1 = std1 * jax.random.normal(k1, (input_dim, h_dim), dtype=jnp.float32)
    b1 = jnp.full((1, h_dim), 0.1, dtype=jnp.float32)
    w2 = std2 * jax.random.normal(k2, (h_dim, y_dim), dtype=jnp.float32)
    b2 = jnp.full((1, y_dim), 0.1, dtype=jnp.float32)
    return (w1, b1, w2, b2)


if __name__ == "__main__":
    # Small shapes consistent with Regressor(layer_size=[input_dim, h_dim, y_dim])
    batch, input_dim, h_dim, y_dim = 8, 32, 64, 8

    key = jax.random.PRNGKey(0)
    kx, kp = jax.random.split(key)
    x = jax.random.normal(kx, (batch, input_dim), dtype=jnp.float32)
    params = init_regressor_params(kp, input_dim, h_dim, y_dim)
    w1, b1, w2, b2 = params

    # --- eval-mode sanity check (dropout is identity) against a pure-JAX reference ---
    out_eval = jax.block_until_ready(regressor_forward(x, params, training=False))
    ref_eval = jnp.maximum(x @ w1 + b1, 0.0) @ w2 + b2
    assert out_eval.shape == (batch, y_dim)
    assert jnp.allclose(out_eval, ref_eval, atol=1e-5, rtol=1e-5), "eval-mode mismatch"

    # --- training-mode forward (dropout active, matches module's default training=True) ---
    out_train = jax.block_until_ready(regressor_forward(x, params, seed=123, training=True))
    assert out_train.shape == (batch, y_dim)
    assert bool(jnp.all(jnp.isfinite(out_train)))

    print("KERNEL_OK")
</pallas_src>

<mosaic_0001>
module attributes {stable_mosaic.version = 11 : i64} {
  func.func @regressor_kernel(%arg0: i32, %arg1: memref<1xi32, #tpu.memory_space<smem>>, %arg2: memref<8x32xf32, #tpu.memory_space<vmem>>, %arg3: memref<32x64xf32, #tpu.memory_space<vmem>>, %arg4: memref<1x72xf32, #tpu.memory_space<vmem>>, %arg5: memref<64x8xf32, #tpu.memory_space<vmem>>, %arg6: memref<8x8xf32, #tpu.memory_space<vmem>>) attributes {dimension_semantics = [#tpu.dimension_semantics<parallel>], iteration_bounds = array<i64: 1>, scalar_prefetch = 1 : i64, scratch_operands = 0 : i64, tpu.core_type = #tpu.core_type<tc>, window_params = [{transform_indices = @transform_0, window_bounds = array<i64: 8, 32>}, {pipeline_mode = #tpu.pipeline_mode<synchronous>, transform_indices = @transform_1, window_bounds = array<i64: 32, 64>}, {pipeline_mode = #tpu.pipeline_mode<synchronous>, transform_indices = @transform_2, window_bounds = array<i64: 1, 72>}, {pipeline_mode = #tpu.pipeline_mode<synchronous>, transform_indices = @transform_3, window_bounds = array<i64: 64, 8>}, {transform_indices = @transform_4, window_bounds = array<i64: 8, 8>}]} {
    %c0 = arith.constant 0 : index
    %c0_0 = arith.constant 0 : index
    %0 = vector.load %arg4[%c0, %c0_0] : memref<1x72xf32, #tpu.memory_space<vmem>>, vector<1x72xf32>
    %1 = vector.extract_strided_slice %0 {offsets = [0, 0], sizes = [1, 64], strides = [1, 1]} : vector<1x72xf32> to vector<1x64xf32>
    %2 = vector.extract_strided_slice %0 {offsets = [0, 64], sizes = [1, 8], strides = [1, 1]} : vector<1x72xf32> to vector<1x8xf32>
    %c0_1 = arith.constant 0 : index
    %c0_2 = arith.constant 0 : index
    %3 = vector.load %arg2[%c0_1, %c0_2] : memref<8x32xf32, #tpu.memory_space<vmem>>, vector<8x32xf32>
    %c0_3 = arith.constant 0 : index
    %c0_4 = arith.constant 0 : index
    %4 = vector.load %arg3[%c0_3, %c0_4] : memref<32x64xf32, #tpu.memory_space<vmem>>, vector<32x64xf32>
    %cst = arith.constant dense<0.000000e+00> : vector<8x64xf32>
    %5 = tpu.matmul %3, %4, %cst {dimension_numbers = #tpu.dot_dimension_numbers<[1], [0], [0], [1], [0, 0, 1, 1], [], []>} : vector<8x32xf32>, vector<32x64xf32>, vector<8x64xf32> -> vector<8x64xf32>
    %6 = vector.broadcast %1 : vector<1x64xf32> to vector<8x64xf32>
    %7 = arith.addf %5, %6 : vector<8x64xf32>
    %cst_5 = arith.constant 0.000000e+00 : f32
    %8 = vector.broadcast %cst_5 : f32 to vector<8x64xf32>
    %9 = arith.maximumf %7, %8 : vector<8x64xf32>
    %c0_6 = arith.constant 0 : index
    %c0_7 = arith.constant 0 : index
    %10 = vector.load %arg5[%c0_6, %c0_7] : memref<64x8xf32, #tpu.memory_space<vmem>>, vector<64x8xf32>
    %cst_8 = arith.constant dense<0.000000e+00> : vector<8x8xf32>
    %11 = tpu.matmul %9, %10, %cst_8 {dimension_numbers = #tpu.dot_dimension_numbers<[1], [0], [0], [1], [0, 0, 1, 1], [], []>} : vector<8x64xf32>, vector<64x8xf32>, vector<8x8xf32> -> vector<8x8xf32>
    %12 = vector.broadcast %2 : vector<1x8xf32> to vector<8x8xf32>
    %13 = arith.addf %11, %12 : vector<8x8xf32>
    %c0_9 = arith.constant 0 : index
    %c0_10 = arith.constant 0 : index
    %14 = vector.load %arg6[%c0_9, %c0_10] : memref<8x8xf32, #tpu.memory_space<vmem>>, vector<8x8xf32>
    tpu.vector_store %arg6[%c0_9, %c0_10], %13 {strides = array<i32>} : memref<8x8xf32, #tpu.memory_space<vmem>>, vector<8x8xf32>,
    return
  }
  func.func @transform_0(%arg0: i32, %arg1: memref<1xi32, #tpu.memory_space<smem>>) -> (i32, i32) {
    %c0_i32 = arith.constant 0 : i32
    %c0_i32_0 = arith.constant 0 : i32
    return %arg0, %c0_i32 : i32, i32
  }
  func.func @transform_1(%arg0: i32, %arg1: memref<1xi32, #tpu.memory_space<smem>>) -> (i32, i32) {
    %c0_i32 = arith.constant 0 : i32
    %c0_i32_0 = arith.constant 0 : i32
    %c0_i32_1 = arith.constant 0 : i32
    return %c0_i32, %c0_i32_0 : i32, i32
  }
  func.func @transform_2(%arg0: i32, %arg1: memref<1xi32, #tpu.memory_space<smem>>) -> (i32, i32) {
    %c0_i32 = arith.constant 0 : i32
    %c0_i32_0 = arith.constant 0 : i32
    %c0_i32_1 = arith.constant 0 : i32
    return %c0_i32, %c0_i32_0 : i32, i32
  }
  func.func @transform_3(%arg0: i32, %arg1: memref<1xi32, #tpu.memory_space<smem>>) -> (i32, i32) {
    %c0_i32 = arith.constant 0 : i32
    %c0_i32_0 = arith.constant 0 : i32
    %c0_i32_1 = arith.constant 0 : i32
    return %c0_i32, %c0_i32_0 : i32, i32
  }
  func.func @transform_4(%arg0: i32, %arg1: memref<1xi32, #tpu.memory_space<smem>>) -> (i32, i32) {
    %c0_i32 = arith.constant 0 : i32
    %c0_i32_0 = arith.constant 0 : i32
    return %arg0, %c0_i32 : i32, i32
  }
}

</mosaic_0001>

<bundles_post_ra>
// kernel: tpu_custom_call.1
= control target key start
LH: loop header
LB: loop body
LE: loop exit
PB: predicated region body
PF: predicated region fallthrough
CT: control target
= control target key end

     0   :  { %v302_v3 = vmov 0.0|0.0   ;;  %vm303_vm0 = vmmov 0   ;;  %v304_v6 = vmov 0.0   ;;  %s391_s0 = inlined_call_operand.<no memory space> [shape: s32[1], index: 0, kind: input, shape index: {}]   ;;  %s392_s1 = inlined_call_operand.vmem [shape: f32[8,32], index: 1, kind: input, shape index: {}]   ;;  %s393_s2 = inlined_call_operand.vmem [shape: f32[32,64], index: 2, kind: input, shape index: {}]   ;;  %s394_s3 = inlined_call_operand.vmem [shape: f32[1,72], index: 3, kind: input, shape index: {}]   ;;  %s395_s4 = inlined_call_operand.vmem [shape: f32[64,8], index: 4, kind: input, shape index: {}]   ;;  %s396_s5 = inlined_call_operand.hbm [shape: f32[8,8], index: 5, kind: output, shape index: {}]  }
   0x1   :  { %v22_v0 = vld [vmem:[%s393_s2] sm:$0xff]  ;;  %v23_v1 = vld [vmem:[%s393_s2 + $0x8] sm:$0xff]  ;;  %v24_v2 = vld [vmem:[%s393_s2 + $0x10] sm:$0xff]  ;;  %255 = vmatprep.subr.bf16.mxu0 %v302_v3  ;;  %233 = vmatprep.mubr.msk.f32.mxu0 %vm303_vm0, %v304_v6 }
   0x2   :  { %v256_v4 = vpack.c.bf16 %v23_v1, %v22_v0  ;;  %v25_v5 = vld [vmem:[%s393_s2 + $0x18] sm:$0xff]  ;;  %v107_v7 = vld [vmem:[%s395_s4] sm:$0xff]  ;;  %261 = vmatprep.subr.bf16.mxu1 %v302_v3  ;;  %v108_v8 = vld [vmem:[%s395_s4 + $0x8] sm:$0xff]  ;;  %252 = vmatprep.mubr.msk.f32.mxu1 %vm303_vm0, %v304_v6 }
   0x3   :  { %v109_v9 = vld [vmem:[%s395_s4 + $0x10] sm:$0xff]  ;;  %v110_v10 = vld [vmem:[%s395_s4 + $0x18] sm:$0xff]  ;;  %v259_v11 = vpack.c.bf16 %v25_v5, %v24_v2  ;;  %v262_v12 = vpack.c.bf16 %v108_v8, %v107_v7 }
   0x4   :  { %257 = vmatpush3.bf16.msra.mxu0 %v256_v4 }
   0x5   :  { %258 = vmatprep.subr.bf16.mxu0 %v302_v3 }
   0x6   :  { %11 = vsyncpa [#allocation5], 0  ;;  %263 = vmatpush3.bf16.msra.mxu1 %v262_v12  ;;  %v265_v13 = vpack.c.bf16 %v110_v10, %v109_v9  ;;  %v111_v14 = vld [vmem:[%s395_s4 + $0x20] sm:$0xff]  ;;  %v112_v15 = vld [vmem:[%s395_s4 + $0x28] sm:$0xff]  ;;  %vm32_vm1 = vcmask 261120   ;;  %vm118_vm2 = vcmask 523264  }
   0x7   :  { %264 = vmatprep.subr.bf16.mxu1 %v302_v3  ;;  %v21_v16 = vld [vmem:[%s392_s1] sm:$0xff]  ;;  %v268_v17 = vpack.c.bf16 %v112_v15, %v111_v14  ;;  %v113_v18 = vld [vmem:[%s395_s4 + $0x30] sm:$0xff]  ;;  %v114_v19 = vld [vmem:[%s395_s4 + $0x38] sm:$0xff]  ;;  %s305_s1 = smov 64   ;;  %s306_s19 = smov [#allocation4]   ;;  %vm192_vm3 = vcmask 64512  }
   0x8   :  { %260 = vmatpush3.bf16.msra.mxu0 %v259_v11  ;;  %v271_v20 = vpack.c.bf16 %v114_v19, %v113_v18  ;;  %v208_v21 = vld [vmem:[%s394_s3] ss:$0 sm:$0xff]  ;;  %s200_s0 = sshll.u32 %s306_s19, 4  ;;  %s201_s0 = int_to_ptr.vmem [resolvable:$true] %s200_s0 }
   0x9   :  { %115 = vrot.lane.b32.xlu0 %v208_v21, %s305_s1  ;;  %s278_s4 = scalar_lea.vmem %s201_s0, 128  ;;  %p283_p1 = scmp.lt.s32.totalorder %s201_s0, %s201_s0 }
   0xa   :  { %266 = vmatpush3.bf16.msra.mxu1 %v265_v13  ;;  %p279_p0 = scmp.ne.s32.totalorder %s201_s0, %s278_s4  ;;  %p284_p2 = scmp.lt.s32.totalorder %s278_s4, %s278_s4 }
   0xb   :  { %234 = vmatmul.mubr.msk.f32.vlgmr.msra.gmra.mrb[0].mxu0 %vm32_vm1, %v21_v16  ;;  %267 = vmatprep.subr.bf16.mxu1 %v302_v3 }
   0xc   :  { %p285_p3 = por %p284_p2, %p283_p1 }
   0xe   :  { %269 = vmatpush3.bf16.msra.mxu1 %v268_v17  ;;  %p286_p4 = pnand %p285_p3, %p279_p0 }
   0xf   :  { %270 = vmatprep.subr.bf16.mxu1 %v302_v3 }
  0x12   :  { %272 = vmatpush3.bf16.msra.mxu1 %v271_v20 }
  0x7b   :  { %v116_v26 = vpop.permute.xlu0 %115 }
  0xde   :  { %v102_v22 = vpop.f32.mrb[0].mxu0 }
  0xdf   :  { %v103_v23 = vadd.f32 %v208_v21, %v102_v22  ;;  %v235_v24 = vpop.f32.mrb[1].mxu0 }
  0xe1   :  { %v106_v25 = vmax.f32 %v103_v23, 0.0 }
  0xe3   :  { %253 = vmatmul.mubr.msk.f32.vlgmr.msra.gmra.mrb[0].mxu1 %vm118_vm2, %v106_v25 }
 0x1b6   :  { %v188_v27 = vpop.f32.mrb[0].mxu1 }
 0x1b7   :  { %v189_v28 = vadd.f32 %v188_v27, %v116_v26  ;;  %v254_v29 = vpop.f32.mrb[1].mxu1 }
 0x1b9   :  { %193 = vst.msk [vmem:[#allocation4] sm:$0xff] %vm192_vm3, %v189_v28 }
 0x1ba   :  { %289 = shalt.err (!%p286_p4)
}
 0x1bb   :  { %s290_s21 = scalar_lea.hbm %s396_s5, 128 }
 0x1bc   :  { %p291_p5 = scmp.ne.s32.totalorder %s396_s5, %s290_s21  ;;  %p294_p6 = scmp.lt.u32.totalorder %s290_s21, %s396_s5 }
 0x1be   :  { %p296_p7 = pnand %p294_p6, %p291_p5 }
 0x1c0   :  { %299 = shalt.err (!%p296_p7)
}
 0x1c1   :  { %203 = dma.vmem_to_hbm [thread:$0]  %s201_s0, 128, %s396_s5, [#allocation5]  }
 0x1c2   :  { %300 = dma.done.wait [#allocation5], 128  }
 0x1c3   :  { %301 = vsyncadd [#allocation5], 4294967168 }
 0x1c4   :  { %207 = vsyncpa [#allocation5], 1 }

</bundles_post_ra>
